<compile_context>
chip_gen: v7x
topology: tpu7x:2x2x1
jax: 0.10.0
libtpu: 0.0.40
codegen_flags: <defaults>
</compile_context>

<pallas_src>
import functools

import numpy as np
import jax
import jax.numpy as jnp
from jax import lax
from jax.experimental import pallas as pl
from jax.experimental.pallas import tpu as pltpu


# ---------------------------------------------------------------------------
# Fused kernel: one grid step == Nb whole images flattened to (Nb*H) matmul rows.
# ---------------------------------------------------------------------------
def _decoder_block2_kernel(h_img, x_ref, a1_ref, b1_ref, w2_ref, b2_ref,
                           w3_ref, b3_ref, o_ref):
    m, wc_in = x_ref.shape            # m = Nb*H rows, wc_in = W*Cin lanes
    wc_mid = b1_ref.shape[1]          # W * Cmid
    f32, bf16 = jnp.float32, jnp.bfloat16

    # Per-image halo row masks (each grid block holds Nb whole images of h_img rows).
    row = lax.broadcasted_iota(jnp.int32, (m, 1), 0) % h_img
    top = row == 0                    # first row of each image
    bot = row == h_img - 1            # last row of each image

    # Row-shifted views via sublane rotation (XLU) + halo mask; no scratch,
    # no per-step zero-fill, no strided sublane stores, no stale-row hazard.
    def shift_up(v):                  # out[r] = v[r-1]; zero on each image's top row
        return jnp.where(top, jnp.zeros_like(v), pltpu.roll(v, shift=1, axis=0))

    def shift_dn(v):                  # out[r] = v[r+1]; zero on each image's bottom row
        return jnp.where(bot, jnp.zeros_like(v), pltpu.roll(v, shift=m - 1, axis=0))

    x = x_ref[...]                                              # (m, W*Cin) f32

    # ---- stage 1: 3x3 conv (+folded BN, ReLU).  Horizontal taps live in the
    # banded weight; each vertical tap is one partial matmul accumulated in f32.
    acc = jnp.dot(x.astype(bf16), a1_ref[wc_in:2 * wc_in, :],
                  preferred_element_type=f32)
    acc += jnp.dot(shift_up(x).astype(bf16), a1_ref[0:wc_in, :],
                   preferred_element_type=f32)
    acc += jnp.dot(shift_dn(x).astype(bf16), a1_ref[2 * wc_in:3 * wc_in, :],
                   preferred_element_type=f32)
    h1 = jnp.maximum(acc + b1_ref[...], 0.0)                    # (m, W*Cmid) f32

    # ---- stage 2: stride-2 transposed conv (+folded BN, ReLU).  The banded
    # weight emits both output-row parities; vertical taps need h1[i], h1[i+1].
    acc = jnp.dot(h1.astype(bf16), w2_ref[0:wc_mid, :],
                  preferred_element_type=f32)
    acc += jnp.dot(shift_dn(h1).astype(bf16), w2_ref[wc_mid:2 * wc_mid, :],
                   preferred_element_type=f32)
    m2 = jnp.maximum(acc + b2_ref[...], 0.0)                    # (m, 4*W*Cmid) f32

    # ---- stage 3: 1x1 conv (+folded BN, ReLU) as a block-diagonal matmul that
    # lands directly in the lane-dense output layout (m, 2*2W*Cout).
    y = jnp.dot(m2.astype(bf16), w3_ref[...], preferred_element_type=f32)
    o_ref[...] = jnp.maximum(y + b3_ref[...], 0.0).astype(o_ref.dtype)


def _pick_batch_tile(n, h, target_rows=128):
    """Images per grid step.  Prefer (a) filling the MXU M dimension
    (nb*h >= target_rows), (b) keeping >= 2 grid steps so v7x's two TensorCores
    can share the "parallel" axis, (c) larger M otherwise, (d) the smaller tile."""
    best_key, best_nb = None, 1
    for d in range(1, n + 1):
        if n % d:
            continue
        key = (d * h >= target_rows, (n // d) >= 2, min(d * h, target_rows), -d)
        if best_key is None or key > best_key:
            best_key, best_nb = key, d
    return best_nb


# ---------------------------------------------------------------------------
# Model-level entry point: NHWC in / NHWC out (all wrapper reshapes are
# contiguous / metadata-only — no HBM transpose passes).
# ---------------------------------------------------------------------------
def decoder_block2_pallas_nhwc(x_nhwc, params):
    a1, b1row, w2all, b2row, w3all, b3row = params
    N, H, W, Cin = x_nhwc.shape
    Cout = b3row.shape[1] // (4 * W)

    nb = _pick_batch_tile(N, H)
    m = nb * H
    assert H >= 2 and (m % 8 == 0 or nb == N), "block rows must be sublane-aligned"

    # (N, H, W, Cin) -> (N*H, W*Cin): contiguous reshape (free).
    x2d = x_nhwc.reshape(N * H, W * Cin)

    flops = 2 * (N * H) * (a1.shape[0] * a1.shape[1]
                           + w2all.shape[0] * w2all.shape[1]
                           + w3all.shape[0] * w3all.shape[1])
    weight_bytes = sum(int(np.prod(a.shape)) * a.dtype.itemsize
                       for a in (a1, b1row, w2all, b2row, w3all, b3row))
    bytes_accessed = (N * H * W * Cin * 4 + N * H * 4 * W * Cout * 4 + weight_bytes)

    out = pl.pallas_call(
        functools.partial(_decoder_block2_kernel, H),
        grid=(N // nb,),
        in_specs=[
            pl.BlockSpec((m, W * Cin), lambda g: (g, 0)),
            # Constant weights (full-extent blocks).  TODO(synk): mark these
            # pipeline_mode=pl.Buffered(1) once W grows and VMEM gets tight.
            pl.BlockSpec(a1.shape, lambda g: (0, 0)),
            pl.BlockSpec(b1row.shape, lambda g: (0, 0)),
            pl.BlockSpec(w2all.shape, lambda g: (0, 0)),
            pl.BlockSpec(b2row.shape, lambda g: (0, 0)),
            pl.BlockSpec(w3all.shape, lambda g: (0, 0)),
            pl.BlockSpec(b3row.shape, lambda g: (0, 0)),
        ],
        out_specs=pl.BlockSpec((m, 4 * W * Cout), lambda g: (g, 0)),
        out_shape=jax.ShapeDtypeStruct((N * H, 4 * W * Cout), jnp.float32),
        compiler_params=pltpu.CompilerParams(
            dimension_semantics=("parallel",)),
        cost_estimate=pl.CostEstimate(flops=flops, transcendentals=0,
                                      bytes_accessed=bytes_accessed),
    )(x2d, a1, b1row, w2all, b2row, w3all, b3row)

    # (N*H, 2*2W*Cout) -> (N, 2H, 2W, Cout): contiguous reshape (free).
    return out.reshape(N, 2 * H, 2 * W, Cout)


def decoder_block2_pallas(x_nchw, params):
    """NCHW compatibility shim for the PyTorch spec.  The two transposes below
    are full HBM passes executed by XLA outside the fused kernel — prefer
    decoder_block2_pallas_nhwc in a real (NHWC) pipeline."""
    y_nhwc = decoder_block2_pallas_nhwc(jnp.transpose(x_nchw, (0, 2, 3, 1)), params)
    return jnp.transpose(y_nhwc, (0, 3, 1, 2))


# ---------------------------------------------------------------------------
# Host-side weight preparation: fold BN into the conv weights and build the
# banded / block matmul weights used by the fused kernel.
# ---------------------------------------------------------------------------
def build_params(w1_t, b1, g1, be1, rm1, rv1,
                 w2_t, b2, g2, be2, rm2, rv2,
                 w3_t, b3, g3, be3, rm3, rv3,
                 H, W, eps=1e-5):
    def fold(gamma, beta, mean, var):
        s = np.asarray(gamma) / np.sqrt(np.asarray(var) + eps)
        t = np.asarray(beta) - np.asarray(mean) * s
        return s, t

    s1, t1 = fold(g1, be1, rm1, rv1)
    s2, t2 = fold(g2, be2, rm2, rv2)
    s3, t3 = fold(g3, be3, rm3, rv3)

    w1 = np.asarray(w1_t)    # (Cmid, Cin, 3, 3)   Conv2d OIHW
    w2 = np.asarray(w2_t)    # (Cmid, Cmid, 3, 3)  ConvTranspose2d (in, out, kH, kW)
    w3 = np.asarray(w3_t)    # (Cout, Cmid, 1, 1)

    Cmid, Cin = w1.shape[0], w1.shape[1]

    # BN folded into conv weights / biases: y = conv(x, w*scale) + (b*scale + shift)
    w1f = np.transpose(w1, (2, 3, 1, 0)) * s1            # (ky, kx, ci, co)
    b1f = np.asarray(b1) * s1 + t1
    w2f = np.transpose(w2, (2, 3, 0, 1)) * s2            # (ky, kx, ci, co)
    b2f = np.asarray(b2) * s2 + t2
    w3f = np.transpose(w3[:, :, 0, 0], (1, 0)) * s3      # (ci, co)
    b3f = np.asarray(b3) * s3 + t3

    # Stage 1: banded matrix. rows = (dy, j_in, ci), cols = (j_out, co).
    A1 = np.zeros((3 * W * Cin, W * Cmid), np.float32)
    for dy in range(3):
        for jout in range(W):
            for dx in range(3):
                jin = jout + dx - 1
                if 0 <= jin < W:
                    A1[dy * W * Cin + jin * Cin:dy * W * Cin + (jin + 1) * Cin,
                       jout * Cmid:(jout + 1) * Cmid] = w1f[dy, dx]
    b1row = np.tile(b1f, W)[None, :].astype(np.float32)          # (1, W*Cmid)

    # Stage 2: stride-2 transposed conv as a banded matrix.
    # input  rows: [ h1[i] (W*Cmid) | h1[i+1] (W*Cmid) ]
    # output cols: [ even out row positions 0..2W-1 | odd out row positions ] x Cmid
    C = Cmid
    W2 = np.zeros((2 * W * C, 4 * W * C), np.float32)

    def put(src_blk, jin, q, wblk):
        if 0 <= jin < W:
            r0 = src_blk * W * C + jin * C
            W2[r0:r0 + C, q * C:(q + 1) * C] += wblk

    for j in range(W):
        # even output row (ky == 1 taps, read h1[i])
        put(0, j,     2 * j,               w2f[1, 1])
        put(0, j,     2 * j + 1,           w2f[1, 2])
        put(0, j + 1, 2 * j + 1,           w2f[1, 0])
        # odd output row (ky == 2 taps read h1[i]; ky == 0 taps read h1[i+1])
        put(0, j,     2 * W + 2 * j,       w2f[2, 1])
        put(1, j,     2 * W + 2 * j,       w2f[0, 1])
        put(0, j,     2 * W + 2 * j + 1,   w2f[2, 2])
        put(0, j + 1, 2 * W + 2 * j + 1,   w2f[2, 0])
        put(1, j,     2 * W + 2 * j + 1,   w2f[0, 2])
        put(1, j + 1, 2 * W + 2 * j + 1,   w2f[0, 0])
    b2row = np.tile(b2f, 4 * W)[None, :].astype(np.float32)      # (1, 4*W*Cmid)

    # Stage 3: 1x1 conv -> block-diagonal over the 4W output positions.
    # (4W x sparser than a dense matmul would need -- acceptable at small W.)
    W3 = np.kron(np.eye(4 * W, dtype=np.float32), w3f.astype(np.float32))
    b3row = np.tile(b3f, 4 * W)[None, :].astype(np.float32)      # (1, 4*W*Cout)

    to_bf16 = lambda a: jnp.asarray(a, jnp.bfloat16)   # MXU operands (bf16, f32 accum)
    to_f32 = lambda a: jnp.asarray(a, jnp.float32)
    return (to_bf16(A1), to_f32(b1row),
            to_bf16(W2), to_f32(b2row),
            to_bf16(W3), to_f32(b3row))


# ---------------------------------------------------------------------------
# Main
# ---------------------------------------------------------------------------
if __name__ == "__main__":
    N, Cin, H, W = 4, 8, 16, 16
    n_filters = 4
    Cmid = Cin // 4
    eps = 1e-5

    key = jax.random.PRNGKey(0)
    ks = jax.random.split(key, 20)

    x_nchw = jax.random.normal(ks[0], (N, Cin, H, W), jnp.float32)

    # conv1: torch weight OIHW (Cmid, Cin, 3, 3), bias (Cmid,), BN1 stats.
    w1_t = 0.2 * jax.random.normal(ks[1], (Cmid, Cin, 3, 3), jnp.float32)
    b1 = 0.1 * jax.random.normal(ks[2], (Cmid,), jnp.float32)
    g1 = 1.0 + 0.1 * jax.random.normal(ks[3], (Cmid,), jnp.float32)
    be1 = 0.1 * jax.random.normal(ks[4], (Cmid,), jnp.float32)
    rm1 = 0.1 * jax.random.normal(ks[5], (Cmid,), jnp.float32)
    rv1 = 1.0 + 0.5 * jax.random.uniform(ks[6], (Cmid,), jnp.float32)

    # deconv2: torch weight (in, out, kH, kW) = (Cmid, Cmid, 3, 3), bias, BN2 stats.
    w2_t = 0.2 * jax.random.normal(ks[7], (Cmid, Cmid, 3, 3), jnp.float32)
    b2 = 0.1 * jax.random.normal(ks[8], (Cmid,), jnp.float32)
    g2 = 1.0 + 0.1 * jax.random.normal(ks[9], (Cmid,), jnp.float32)
    be2 = 0.1 * jax.random.normal(ks[10], (Cmid,), jnp.float32)
    rm2 = 0.1 * jax.random.normal(ks[11], (Cmid,), jnp.float32)
    rv2 = 1.0 + 0.5 * jax.random.uniform(ks[12], (Cmid,), jnp.float32)

    # conv3: torch weight (n_filters, Cmid, 1, 1), bias, BN3 stats.
    w3_t = 0.2 * jax.random.normal(ks[13], (n_filters, Cmid, 1, 1), jnp.float32)
    b3 = 0.1 * jax.random.normal(ks[14], (n_filters,), jnp.float32)
    g3 = 1.0 + 0.1 * jax.random.normal(ks[15], (n_filters,), jnp.float32)
    be3 = 0.1 * jax.random.normal(ks[16], (n_filters,), jnp.float32)
    rm3 = 0.1 * jax.random.normal(ks[17], (n_filters,), jnp.float32)
    rv3 = 1.0 + 0.5 * jax.random.uniform(ks[18], (n_filters,), jnp.float32)

    params = build_params(w1_t, b1, g1, be1, rm1, rv1,
                          w2_t, b2, g2, be2, rm2, rv2,
                          w3_t, b3, g3, be3, rm3, rv3,
                          H, W, eps)

    fwd = jax.jit(lambda xx: decoder_block2_pallas(xx, params))
    out = jax.block_until_ready(fwd(x_nchw))
    assert out.shape == (N, n_filters, 2 * H, 2 * W), out.shape

    # Pure-JAX (XLA, f32) reference of the same forward pass for correctness.
    def fold_bn(gamma, beta, mean, var):
        scale = gamma / jnp.sqrt(var + eps)
        shift = beta - mean * scale
        return scale, shift

    s1, t1 = fold_bn(g1, be1, rm1, rv1)
    s2, t2 = fold_bn(g2, be2, rm2, rv2)
    s3, t3 = fold_bn(g3, be3, rm3, rv3)
    w1 = jnp.transpose(w1_t, (2, 3, 1, 0))            # (3,3,Cin,Cmid) HWIO
    w2 = jnp.transpose(w2_t, (2, 3, 0, 1))            # (ky,kx,ci,co)
    w3 = jnp.transpose(w3_t[:, :, 0, 0], (1, 0))      # (Cmid, n_filters)

    def reference(x_in):
        dn = ("NHWC", "HWIO", "NHWC")
        x = jnp.transpose(x_in, (0, 2, 3, 1))
        y = lax.conv_general_dilated(x, w1, (1, 1), ((1, 1), (1, 1)),
                                     dimension_numbers=dn)
        y = jnp.maximum((y + b1) * s1 + t1, 0.0)
        # ConvTranspose2d(k=3,s=2,p=1,op=1) == dilated conv with flipped kernel
        w2flip = w2[::-1, ::-1, :, :]
        y = lax.conv_general_dilated(y, w2flip, (1, 1), ((1, 2), (1, 2)),
                                     lhs_dilation=(2, 2), dimension_numbers=dn)
        y = jnp.maximum((y + b2) * s2 + t2, 0.0)
        y = lax.conv_general_dilated(y, w3.reshape(1, 1, Cmid, n_filters),
                                     (1, 1), ((0, 0), (0, 0)),
                                     dimension_numbers=dn)
        y = jnp.maximum((y + b3) * s3 + t3, 0.0)
        return jnp.transpose(y, (0, 3, 1, 2))

    ref = jax.block_until_ready(jax.jit(reference)(x_nchw))
    # Kernel uses bf16 MXU operands (f32 accumulation) -> loosened tolerance
    # against the f32 reference (accuracy contract of this kernel).
    np.testing.assert_allclose(np.asarray(out), np.asarray(ref),
                               rtol=5e-2, atol=5e-2)

    print("KERNEL_OK")
</pallas_src>

<mosaic_0001>
module attributes {stable_mosaic.version = 11 : i64} {
  func.func @_decoder_block2_kernel(%arg0: i32, %arg1: memref<32x128xf32, #tpu.memory_space<vmem>>, %arg2: memref<384x32xbf16, #tpu.memory_space<vmem>>, %arg3: memref<1x32xf32, #tpu.memory_space<vmem>>, %arg4: memref<64x128xbf16, #tpu.memory_space<vmem>>, %arg5: memref<1x128xf32, #tpu.memory_space<vmem>>, %arg6: memref<128x256xbf16, #tpu.memory_space<vmem>>, %arg7: memref<1x256xf32, #tpu.memory_space<vmem>>, %arg8: memref<32x256xf32, #tpu.memory_space<vmem>>) attributes {dimension_semantics = [#tpu.dimension_semantics<parallel>], iteration_bounds = array<i64: 2>, scalar_prefetch = 0 : i64, scratch_operands = 0 : i64, tpu.core_type = #tpu.core_type<tc>, window_params = [{transform_indices = @transform_0, window_bounds = array<i64: 32, 128>}, {pipeline_mode = #tpu.pipeline_mode<synchronous>, transform_indices = @transform_1, window_bounds = array<i64: 384, 32>}, {pipeline_mode = #tpu.pipeline_mode<synchronous>, transform_indices = @transform_2, window_bounds = array<i64: 1, 32>}, {pipeline_mode = #tpu.pipeline_mode<synchronous>, transform_indices = @transform_3, window_bounds = array<i64: 64, 128>}, {pipeline_mode = #tpu.pipeline_mode<synchronous>, transform_indices = @transform_4, window_bounds = array<i64: 1, 128>}, {pipeline_mode = #tpu.pipeline_mode<synchronous>, transform_indices = @transform_5, window_bounds = array<i64: 128, 256>}, {pipeline_mode = #tpu.pipeline_mode<synchronous>, transform_indices = @transform_6, window_bounds = array<i64: 1, 256>}, {transform_indices = @transform_7, window_bounds = array<i64: 32, 256>}]} {
    %0 = tpu.iota {dimensions = array<i32: 0>} : vector<32x1xi32>
    %c16_i32 = arith.constant 16 : i32
    %c0_i32 = arith.constant 0 : i32
    %1 = arith.cmpi eq, %c16_i32, %c0_i32 : i32
    %c1_i32 = arith.constant 1 : i32
    %2 = arith.select %1, %c1_i32, %c16_i32 : i32
    %3 = vector.broadcast %2 : i32 to vector<32x1xi32>
    %4 = arith.remsi %0, %3 : vector<32x1xi32>
    %c0_i32_0 = arith.constant 0 : i32
    %5 = vector.broadcast %c0_i32_0 : i32 to vector<32x1xi32>
    %6 = arith.cmpi ne, %4, %5 : vector<32x1xi32>
    %c0_i32_1 = arith.constant 0 : i32
    %7 = vector.broadcast %c0_i32_1 : i32 to vector<32x1xi32>
    %8 = arith.cmpi slt, %4, %7 : vector<32x1xi32>
    %c0_i32_2 = arith.constant 0 : i32
    %9 = arith.cmpi slt, %2, %c0_i32_2 : i32
    %10 = vector.broadcast %9 : i1 to vector<32x1xi1>
    %11 = vector.broadcast %10 : vector<32x1xi1> to vector<32x1xi1>
    %12 = arith.xori %8, %11 : vector<32x1xi1>
    %13 = arith.andi %12, %6 : vector<32x1xi1>
    %14 = vector.broadcast %2 : i32 to vector<32x1xi32>
    %15 = arith.addi %4, %14 : vector<32x1xi32>
    %16 = arith.select %13, %15, %4 : vector<32x1xi1>, vector<32x1xi32>
    %c0_i32_3 = arith.constant 0 : i32
    %17 = vector.broadcast %c0_i32_3 : i32 to vector<32x1xi32>
    %18 = arith.cmpi eq, %16, %17 : vector<32x1xi32>
    %c15_i32 = arith.constant 15 : i32
    %19 = vector.broadcast %c15_i32 : i32 to vector<32x1xi32>
    %20 = arith.cmpi eq, %16, %19 : vector<32x1xi32>
    %c0 = arith.constant 0 : index
    %c0_4 = arith.constant 0 : index
    %21 = vector.load %arg1[%c0, %c0_4] : memref<32x128xf32, #tpu.memory_space<vmem>>, vector<32x128xf32>
    %22 = arith.truncf %21 : vector<32x128xf32> to vector<32x128xbf16>
    %c128 = arith.constant 128 : index
    %c0_5 = arith.constant 0 : index
    %23 = vector.load %arg2[%c128, %c0_5] : memref<384x32xbf16, #tpu.memory_space<vmem>>, vector<128x32xbf16>
    %cst = arith.constant dense<0.000000e+00> : vector<32x32xf32>
    %24 = tpu.matmul %22, %23, %cst {dimension_numbers = #tpu.dot_dimension_numbers<[1], [0], [0], [1], [0, 0, 1, 1], [], []>} : vector<32x128xbf16>, vector<128x32xbf16>, vector<32x32xf32> -> vector<32x32xf32>
    %cst_6 = arith.constant 0.000000e+00 : f32
    %25 = vector.broadcast %cst_6 : f32 to vector<32x128xf32>
    %c1_i32_7 = arith.constant 1 : i32
    %26 = tpu.dynamic_rotate %21 by %c1_i32_7 dim 0 : vector<32x128xf32>, i32 -> vector<32x128xf32>
    %27 = vector.shape_cast %18 : vector<32x1xi1> to vector<32x1xi1>
    %28 = vector.broadcast %27 : vector<32x1xi1> to vector<32x128xi1>
    %29 = arith.select %28, %25, %26 : vector<32x128xi1>, vector<32x128xf32>
    %30 = arith.truncf %29 : vector<32x128xf32> to vector<32x128xbf16>
    %c0_8 = arith.constant 0 : index
    %c0_9 = arith.constant 0 : index
    %31 = vector.load %arg2[%c0_8, %c0_9] : memref<384x32xbf16, #tpu.memory_space<vmem>>, vector<128x32xbf16>
    %cst_10 = arith.constant dense<0.000000e+00> : vector<32x32xf32>
    %32 = tpu.matmul %30, %31, %cst_10 {dimension_numbers = #tpu.dot_dimension_numbers<[1], [0], [0], [1], [0, 0, 1, 1], [], []>} : vector<32x128xbf16>, vector<128x32xbf16>, vector<32x32xf32> -> vector<32x32xf32>
    %33 = arith.addf %24, %32 : vector<32x32xf32>
    %cst_11 = arith.constant 0.000000e+00 : f32
    %34 = vector.broadcast %cst_11 : f32 to vector<32x128xf32>
    %c31_i32 = arith.constant 31 : i32
    %35 = tpu.dynamic_rotate %21 by %c31_i32 dim 0 : vector<32x128xf32>, i32 -> vector<32x128xf32>
    %36 = vector.shape_cast %20 : vector<32x1xi1> to vector<32x1xi1>
    %37 = vector.broadcast %36 : vector<32x1xi1> to vector<32x128xi1>
    %38 = arith.select %37, %34, %35 : vector<32x128xi1>, vector<32x128xf32>
    %39 = arith.truncf %38 : vector<32x128xf32> to vector<32x128xbf16>
    %c256 = arith.constant 256 : index
    %c0_12 = arith.constant 0 : index
    %40 = vector.load %arg2[%c256, %c0_12] : memref<384x32xbf16, #tpu.memory_space<vmem>>, vector<128x32xbf16>
    %cst_13 = arith.constant dense<0.000000e+00> : vector<32x32xf32>
    %41 = tpu.matmul %39, %40, %cst_13 {dimension_numbers = #tpu.dot_dimension_numbers<[1], [0], [0], [1], [0, 0, 1, 1], [], []>} : vector<32x128xbf16>, vector<128x32xbf16>, vector<32x32xf32> -> vector<32x32xf32>
    %42 = arith.addf %33, %41 : vector<32x32xf32>
    %c0_14 = arith.constant 0 : index
    %c0_15 = arith.constant 0 : index
    %43 = vector.load %arg3[%c0_14, %c0_15] : memref<1x32xf32, #tpu.memory_space<vmem>>, vector<1x32xf32>
    %44 = vector.broadcast %43 : vector<1x32xf32> to vector<32x32xf32>
    %45 = arith.addf %42, %44 : vector<32x32xf32>
    %cst_16 = arith.constant 0.000000e+00 : f32
    %46 = vector.broadcast %cst_16 : f32 to vector<32x32xf32>
    %47 = arith.maximumf %45, %46 : vector<32x32xf32>
    %48 = arith.truncf %47 : vector<32x32xf32> to vector<32x32xbf16>
    %c0_17 = arith.constant 0 : index
    %c0_18 = arith.constant 0 : index
    %49 = vector.load %arg4[%c0_17, %c0_18] : memref<64x128xbf16, #tpu.memory_space<vmem>>, vector<32x128xbf16>
    %cst_19 = arith.constant dense<0.000000e+00> : vector<32x128xf32>
    %50 = tpu.matmul %48, %49, %cst_19 {dimension_numbers = #tpu.dot_dimension_numbers<[1], [0], [0], [1], [0, 0, 1, 1], [], []>} : vector<32x32xbf16>, vector<32x128xbf16>, vector<32x128xf32> -> vector<32x128xf32>
    %cst_20 = arith.constant 0.000000e+00 : f32
    %51 = vector.broadcast %cst_20 : f32 to vector<32x32xf32>
    %c31_i32_21 = arith.constant 31 : i32
    %52 = tpu.dynamic_rotate %47 by %c31_i32_21 dim 0 : vector<32x32xf32>, i32 -> vector<32x32xf32>
    %53 = vector.shape_cast %20 : vector<32x1xi1> to vector<32x1xi1>
    %54 = vector.broadcast %53 : vector<32x1xi1> to vector<32x32xi1>
    %55 = arith.select %54, %51, %52 : vector<32x32xi1>, vector<32x32xf32>
    %56 = arith.truncf %55 : vector<32x32xf32> to vector<32x32xbf16>
    %c32 = arith.constant 32 : index
    %c0_22 = arith.constant 0 : index
    %57 = vector.load %arg4[%c32, %c0_22] : memref<64x128xbf16, #tpu.memory_space<vmem>>, vector<32x128xbf16>
    %cst_23 = arith.constant dense<0.000000e+00> : vector<32x128xf32>
    %58 = tpu.matmul %56, %57, %cst_23 {dimension_numbers = #tpu.dot_dimension_numbers<[1], [0], [0], [1], [0, 0, 1, 1], [], []>} : vector<32x32xbf16>, vector<32x128xbf16>, vector<32x128xf32> -> vector<32x128xf32>
    %59 = arith.addf %50, %58 : vector<32x128xf32>
    %c0_24 = arith.constant 0 : index
    %c0_25 = arith.constant 0 : index
    %60 = vector.load %arg5[%c0_24, %c0_25] : memref<1x128xf32, #tpu.memory_space<vmem>>, vector<1x128xf32>
    %61 = vector.broadcast %60 : vector<1x128xf32> to vector<32x128xf32>
    %62 = arith.addf %59, %61 : vector<32x128xf32>
    %cst_26 = arith.constant 0.000000e+00 : f32
    %63 = vector.broadcast %cst_26 : f32 to vector<32x128xf32>
    %64 = arith.maximumf %62, %63 : vector<32x128xf32>
    %65 = arith.truncf %64 : vector<32x128xf32> to vector<32x128xbf16>
    %c0_27 = arith.constant 0 : index
    %c0_28 = arith.constant 0 : index
    %66 = vector.load %arg6[%c0_27, %c0_28] : memref<128x256xbf16, #tpu.memory_space<vmem>>, vector<128x256xbf16>
    %cst_29 = arith.constant dense<0.000000e+00> : vector<32x256xf32>
    %67 = tpu.matmul %65, %66, %cst_29 {dimension_numbers = #tpu.dot_dimension_numbers<[1], [0], [0], [1], [0, 0, 1, 1], [], []>} : vector<32x128xbf16>, vector<128x256xbf16>, vector<32x256xf32> -> vector<32x256xf32>
    %c0_30 = arith.constant 0 : index
    %c0_31 = arith.constant 0 : index
    %68 = vector.load %arg7[%c0_30, %c0_31] : memref<1x256xf32, #tpu.memory_space<vmem>>, vector<1x256xf32>
    %69 = vector.broadcast %68 : vector<1x256xf32> to vector<32x256xf32>
    %70 = arith.addf %67, %69 : vector<32x256xf32>
    %cst_32 = arith.constant 0.000000e+00 : f32
    %71 = vector.broadcast %cst_32 : f32 to vector<32x256xf32>
    %72 = arith.maximumf %70, %71 : vector<32x256xf32>
    %c0_33 = arith.constant 0 : index
    %c0_34 = arith.constant 0 : index
    %73 = vector.load %arg8[%c0_33, %c0_34] : memref<32x256xf32, #tpu.memory_space<vmem>>, vector<32x256xf32>
    tpu.vector_store %arg8[%c0_33, %c0_34], %72 {strides = array<i32>} : memref<32x256xf32, #tpu.memory_space<vmem>>, vector<32x256xf32>,
    return
  }
  func.func @transform_0(%arg0: i32) -> (i32, i32) {
    %c0_i32 = arith.constant 0 : i32
    %c0_i32_0 = arith.constant 0 : i32
    return %arg0, %c0_i32 : i32, i32
  }
  func.func @transform_1(%arg0: i32) -> (i32, i32) {
    %c0_i32 = arith.constant 0 : i32
    %c0_i32_0 = arith.constant 0 : i32
    %c0_i32_1 = arith.constant 0 : i32
    return %c0_i32, %c0_i32_0 : i32, i32
  }
  func.func @transform_2(%arg0: i32) -> (i32, i32) {
    %c0_i32 = arith.constant 0 : i32
    %c0_i32_0 = arith.constant 0 : i32
    %c0_i32_1 = arith.constant 0 : i32
    return %c0_i32, %c0_i32_0 : i32, i32
  }
  func.func @transform_3(%arg0: i32) -> (i32, i32) {
    %c0_i32 = arith.constant 0 : i32
    %c0_i32_0 = arith.constant 0 : i32
    %c0_i32_1 = arith.constant 0 : i32
    return %c0_i32, %c0_i32_0 : i32, i32
  }
  func.func @transform_4(%arg0: i32) -> (i32, i32) {
    %c0_i32 = arith.constant 0 : i32
    %c0_i32_0 = arith.constant 0 : i32
    %c0_i32_1 = arith.constant 0 : i32
    return %c0_i32, %c0_i32_0 : i32, i32
  }
  func.func @transform_5(%arg0: i32) -> (i32, i32) {
    %c0_i32 = arith.constant 0 : i32
    %c0_i32_0 = arith.constant 0 : i32
    %c0_i32_1 = arith.constant 0 : i32
    return %c0_i32, %c0_i32_0 : i32, i32
  }
  func.func @transform_6(%arg0: i32) -> (i32, i32) {
    %c0_i32 = arith.constant 0 : i32
    %c0_i32_0 = arith.constant 0 : i32
    %c0_i32_1 = arith.constant 0 : i32
    return %c0_i32, %c0_i32_0 : i32, i32
  }
  func.func @transform_7(%arg0: i32) -> (i32, i32) {
    %c0_i32 = arith.constant 0 : i32
    %c0_i32_0 = arith.constant 0 : i32
    return %arg0, %c0_i32 : i32, i32
  }
}

</mosaic_0001>

<bundles_post_ra>
// kernel: _lambda_.1
= control target key start
LH: loop header
LB: loop body
LE: loop exit
PB: predicated region body
PF: predicated region fallthrough
CT: control target
= control target key end

     0   :  { %12 = vsyncpa [#allocation3], 0  ;;  %s2139_s0 = inlined_call_operand.vmem [shape: f32[64,128], index: 0, kind: input, shape index: {}]   ;;  %s2140_s1 = inlined_call_operand.hbm [shape: bf16[384,32], index: 1, kind: input, shape index: {}]   ;;  %s2141_s2 = inlined_call_operand.hbm [shape: f32[1,32], index: 2, kind: input, shape index: {}]   ;;  %s2142_s3 = inlined_call_operand.hbm [shape: bf16[64,128], index: 3, kind: input, shape index: {}]   ;;  %s2143_s4 = inlined_call_operand.hbm [shape: f32[1,128], index: 4, kind: input, shape index: {}]   ;;  %s2144_s5 = inlined_call_operand.vmem [shape: bf16[128,256], index: 5, kind: input, shape index: {}]   ;;  %s2145_s6 = inlined_call_operand.hbm [shape: f32[1,256], index: 6, kind: input, shape index: {}]   ;;  %s2146_s7 = inlined_call_operand.vmem [shape: f32[64,256], index: 7, kind: output, shape index: {}]  }
   0x1   :  { %13 = vsyncpa [#allocation5], 0 }
   0x2   :  { %14 = vsyncpa [#allocation8], 0  ;;  %s1825_s24 = smov 0  }
   0x3 LB: > { %s1776_s25 = smov [#allocation4]   ;;  %s1284_s27 = sadd.s32 4294967295, %s1774_s24   ;;  %s1774_s24 = sphi %s1825_s24, %s20_s24  }
   0x4   : > { %s229_s26 = sshll.u32 %s1776_s25, 4  ;;  %p1286_p0 = scmp.ge.s32.totalorder %s1774_s24, 1  ;;  %s1839_s26 = int_to_ptr.vmem [resolvable:$true] %s229_s26 }
   0x5   : > { %p203_p1 = scmp.lt.s32.totalorder %s1774_s24, 3  ;;  %p1835_p2 = scmp.eq.s32.totalorder %s1284_s27, 0 }
   0x6   : > { %s1777_s30 = smov [#allocation7]   ;;  %s1778_s9 = smov [#allocation2]  }
   0x7   : > { %s2150_s28 = scalar_select %p1835_p2, 1, 0 }
   0x8   : > { %p1841_p3 = pnand %p1286_p0, %p203_p1  ;;  %s253_s8 = sshll.u32 %s1777_s30, 4  ;;  %s1847_s8 = int_to_ptr.vmem [resolvable:$true] %s253_s8 }
   0x9   : > { %s215_s10 = sshll.u32 %s1778_s9, 4  ;;  %s1779_s12 = smov [#allocation6]   ;;  %s1855_s10 = int_to_ptr.vmem [resolvable:$true] %s215_s10 }
   0xa   : > { %s2151_s29 = scalar_select %p1841_p3, 1, 0 }
   0xb   : > { %p1521_p4 = pneg %p1841_p3  ;;  %s1857_s13 = sshll.u32 %s1779_s12, 4  ;;  %s240_s13 = int_to_ptr.vmem [resolvable:$true] %s1857_s13 }
   0xc   : > { %s1616_s16 = scalar_lea.hbm %s2141_s2, 16 }
   0xd   : > { %p1851_p5 = pnand %p1835_p2, %p1521_p4  ;;  %p1617_p6 = scmp.ne.s32.totalorder %s2141_s2, %s1616_s16 }
   0xe   : > { %p1623_p10 = scmp.lt.u32.totalorder %s1616_s16, %s2141_s2 }
   0xf   : > { %p1867_p7 = pneg %p1851_p5 }
  0x11   : > { %p1619_p8 = pnand %p1867_p7, %p1617_p6 }
  0x13   : > { %p1620_p9 = pneg %p1619_p8 }
  0x15   : > { %p1625_p11 = pnand %p1623_p10, %p1620_p9 }
  0x17   : > { %1628 = shalt.err (!%p1625_p11)
}
  0x18   : > { %s1629_s22 = scalar_lea.vmem %s1839_s26, 16  ;;  %s1636_s23 = scalar_lea.vmem %s1839_s26, 32 }
  0x19   : > { %p1630_p12 = scmp.ne.s32.totalorder %s1839_s26, %s1629_s22  ;;  %p1637_p1 = scmp.lt.s32.totalorder %s1839_s26, %s1839_s26 }
  0x1a   : > { %p1638_p4 = scmp.lt.s32.totalorder %s1636_s23, %s1629_s22 }
  0x1b   : > { %p1632_p13 = pnand %p1630_p12, %p1867_p7 }
  0x1c   : > { %p1639_p6 = por %p1638_p4, %p1637_p1 }
  0x1d   : > { %p1633_p0 = pneg %p1632_p13 }
  0x1f   : > { %p1640_p8 = pnand %p1639_p6, %p1633_p0 }
  0x21   : > { %1643 = shalt.err (!%p1640_p8)
}
  0x22   : > { %1527 = dma.hbm_to_vmem [thread:$0]  (!%p1851_p5), %s2141_s2, 16, %s1839_s26, [#allocation5]  }
  0x23   : > { %s1644_s14 = scalar_lea.hbm %s2143_s4, 16 }
  0x24   : > { %p1645_p9 = scmp.ne.s32.totalorder %s2143_s4, %s1644_s14  ;;  %p1651_p12 = scmp.lt.u32.totalorder %s1644_s14, %s2143_s4 }
  0x26   : > { %p1647_p10 = pnand %p1645_p9, %p1867_p7 }
  0x28   : > { %p1648_p11 = pneg %p1647_p10 }
  0x2a   : > { %p1653_p13 = pnand %p1651_p12, %p1648_p11 }
  0x2c   : > { %1656 = shalt.err (!%p1653_p13)
}
  0x2d   : > { %s1657_s26 = scalar_lea.vmem %s1847_s8, 16  ;;  %s1664_s20 = scalar_lea.vmem %s1847_s8, 32 }
  0x2e   : > { %p1658_p0 = scmp.ne.s32.totalorder %s1847_s8, %s1657_s26  ;;  %p1665_p6 = scmp.lt.s32.totalorder %s1847_s8, %s1847_s8 }
  0x2f   : > { %p1666_p8 = scmp.lt.s32.totalorder %s1664_s20, %s1657_s26 }
  0x30   : > { %p1660_p1 = pnand %p1658_p0, %p1867_p7 }
  0x31   : > { %p1667_p9 = por %p1666_p8, %p1665_p6 }
  0x32   : > { %p1661_p4 = pneg %p1660_p1 }
  0x34   : > { %p1668_p10 = pnand %p1667_p9, %p1661_p4 }
  0x36   : > { %1671 = shalt.err (!%p1668_p10)
}
  0x37   : > { %1533 = dma.hbm_to_vmem [thread:$0]  (!%p1851_p5), %s2143_s4, 16, %s1847_s8, [#allocation8]  }
  0x38   : > { %s1672_s30 = scalar_lea.hbm %s2140_s1, 3072 }
  0x39   : > { %p1673_p11 = scmp.ne.s32.totalorder %s2140_s1, %s1672_s30  ;;  %p1679_p0 = scmp.lt.u32.totalorder %s1672_s30, %s2140_s1 }
  0x3b   : > { %p1675_p12 = pnand %p1673_p11, %p1867_p7 }
  0x3d   : > { %p1676_p13 = pneg %p1675_p12 }
  0x3f   : > { %p1681_p1 = pnand %p1679_p0, %p1676_p13 }
  0x41   : > { %1684 = shalt.err (!%p1681_p1)
}
  0x42   : > { %s1685_s8 = scalar_lea.vmem %s1855_s10, 3072  ;;  %p1693_p9 = scmp.lt.s32.totalorder %s1855_s10, %s1855_s10 }
  0x43   : > { %p1686_p4 = scmp.ne.s32.totalorder %s1855_s10, %s1685_s8  ;;  %p1694_p10 = scmp.lt.s32.totalorder %s1685_s8, %s1685_s8 }
  0x45   : > { %p1688_p6 = pnand %p1686_p4, %p1867_p7  ;;  %p1695_p11 = por %p1694_p10, %p1693_p9 }
  0x47   : > { %p1689_p8 = pneg %p1688_p6 }
  0x49   : > { %p1696_p12 = pnand %p1695_p11, %p1689_p8 }
  0x4b   : > { %1699 = shalt.err (!%p1696_p12)
}
  0x4c   : > { %s1780_s16 = smov 64   ;;  %s1781_s17 = smov 4  }
  0x4d   : > { %1524 = dma.hbm_to_vmem [thread:$0]  (!%p1851_p5), %s2140_s1, 3072, %s1855_s10, [#allocation3], %s1780_s16, %s1780_s16, %s1781_s17  }
  0x4e   : > { %s1700_s22 = scalar_lea.hbm %s2142_s3, 512 }
  0x4f   : > { %p1701_p13 = scmp.ne.s32.totalorder %s2142_s3, %s1700_s22  ;;  %p1707_p4 = scmp.lt.u32.totalorder %s1700_s22, %s2142_s3 }
  0x51   : > { %p1703_p0 = pnand %p1701_p13, %p1867_p7 }
  0x53   : > { %p1704_p1 = pneg %p1703_p0 }
  0x55   : > { %p1709_p6 = pnand %p1707_p4, %p1704_p1 }
  0x57   : > { %1712 = shalt.err (!%p1709_p6)
}
  0x58   : > { %s1713_s12 = scalar_lea.vmem %s240_s13, 512  ;;  %p1721_p11 = scmp.lt.s32.totalorder %s240_s13, %s240_s13 }
  0x59   : > { %p1714_p8 = scmp.ne.s32.totalorder %s240_s13, %s1713_s12  ;;  %p1722_p12 = scmp.lt.s32.totalorder %s1713_s12, %s1713_s12 }
  0x5b   : > { %p1716_p9 = pnand %p1714_p8, %p1867_p7  ;;  %p1723_p2 = por %p1722_p12, %p1721_p11 }
  0x5d   : > { %p1717_p10 = pneg %p1716_p9 }
  0x5f   : > { %p1724_p3 = pnand %p1723_p2, %p1717_p10 }
  0x61   : > { %1727 = shalt.err (!%p1724_p3)
}
  0x62   : > { %1530 = dma.hbm_to_vmem [thread:$0]  (!%p1851_p5), %s2142_s3, 512, %s240_s13, [#allocation5], %s1780_s16, %s1780_s16, %s1781_s17  }
  0x63   : > { %s1782_s15 = smov [#allocation9]   ;;  %s1728_s20 = scalar_lea.hbm %s2145_s6, 32 }
  0x64   : > { %s267_s8 = sshll.u32 %s1782_s15, 4  ;;  %p1729_p13 = scmp.ne.s32.totalorder %s2145_s6, %s1728_s20  ;;  %s268_s8 = int_to_ptr.vmem [resolvable:$true] %s267_s8 }
  0x65   : > { %p1735_p0 = scmp.lt.u32.totalorder %s1728_s20, %s2145_s6 }
  0x66   : > { %p1731_p2 = pnand %p1729_p13, %p1867_p7 }
  0x68   : > { %p1732_p3 = pneg %p1731_p2 }
  0x6a   : > { %p1737_p1 = pnand %p1735_p0, %p1732_p3 }
  0x6c   : > { %1740 = shalt.err (!%p1737_p1)
}
  0x6d   : > { %s1741_s13 = scalar_lea.vmem %s268_s8, 32  ;;  %p1749_p9 = scmp.lt.s32.totalorder %s268_s8, %s268_s8 }
  0x6e   : > { %p1742_p4 = scmp.ne.s32.totalorder %s268_s8, %s1741_s13  ;;  %p1750_p10 = scmp.lt.s32.totalorder %s1741_s13, %s1741_s13 }
  0x70   : > { %p1744_p6 = pnand %p1742_p4, %p1867_p7  ;;  %p1751_p11 = por %p1750_p10, %p1749_p9 }
  0x72   : > { %p1745_p8 = pneg %p1744_p6 }
  0x74   : > { %p1752_p12 = pnand %p1751_p11, %p1745_p8 }
  0x76   : > { %1755 = shalt.err (!%p1752_p12)
}
  0x77   : > { %1536 = dma.hbm_to_vmem [thread:$0]  (!%p1851_p5), %s2145_s6, 32, %s268_s8, [#allocation8]  }
  0x78   : > { %p2154_p13 = scmp.ne.s32.totalorder %s2151_s29, 0 }
  0x79   : > { %p2155_p2 = scmp.ne.s32.totalorder (!%p2154_p13), %s2150_s28, 0 }
  0x7a   : > { %289 = sbr.rel (%p2154_p13) target bundleno = 878 (0x36e), region = 48 }
  0x81   : > { %1761 = dma.done.wait (%p2155_p2), [#allocation3], 3072  }
  0x82   : > { %1763 = vsyncadd (%p2155_p2), [#allocation3], 4294964224 }
  0x83   : > { %1765 = dma.done.wait (%p2155_p2), [#allocation5], 528  }
  0x84   : > { %1767 = vsyncadd (%p2155_p2), [#allocation5], 4294966768 }
  0x85   : > { %1769 = dma.done.wait (%p2155_p2), [#allocation8], 48  }
  0x86   : > { %1771 = vsyncadd (%p2155_p2), [#allocation8], 4294967248  ;;  %s1299_s29 = sshll.u32 %s1284_s27, 2  ;;  %v1564_v0 = vld [vmem:[#allocation2 + $0x40] sm:$0xff]   ;;  %v1565_v1 = vld [vmem:[#allocation2 + $0x48] sm:$0xff]   ;;  %v352_v2 = vlaneseq  ;;  %vm1783_vm2 = vmmov 1  }
  0x87   : > { %p339_p5 = scmp.lt.s32.totalorder %s1299_s29, 7  ;;  %1433 = vmatprep.subr.bf16.mxu0 %v1564_v0  ;;  %v1566_v3 = vld [vmem:[#allocation2 + $0x50] sm:$0xff]   ;;  %v1567_v5 = vld [vmem:[#allocation2 + $0x58] sm:$0xff]   ;;  %v1572_v6 = vld [vmem:[#allocation2] sm:$0xff]   ;;  %vm859_vm13 = vcmask 261120  }
  0x88   : > { %1434 = vmatpush3.bf16.msra.mxu0 %v1564_v0  ;;  %v1997_v4 = vshrl.u32 %v352_v2, 7  ;;  %1413 = vmatprep.subr.bf16.mxu1 %v1572_v6  ;;  %v1574_v13 = vld [vmem:[#allocation2 + $0x8] sm:$0xff]   ;;  %v1568_v14 = vld [vmem:[#allocation2 + $0x60] sm:$0xff]   ;;  %v1576_v17 = vld [vmem:[#allocation2 + $0x10] sm:$0xff]  }
  0x89   : > { %s2163_s29 = smov (!%p339_p5, %s1299_s29), 7  ;;  %1435 = vmatprep.subr.bf16.mxu0 %v1565_v1  ;;  %1414 = vmatpush3.bf16.msra.mxu1 %v1572_v6  ;;  %v1569_v20 = vld [vmem:[#allocation2 + $0x68] sm:$0xff]   ;;  %v1578_v21 = vld [vmem:[#allocation2 + $0x18] sm:$0xff]   ;;  %v1570_v24 = vld [vmem:[#allocation2 + $0x70] sm:$0xff]  }
  0x8a   : > { %s1300_s11 = sshll.u32 %s2163_s29, 3  ;;  %v361_v12 = vand.u32 15, %v1997_v4  ;;  %vm439_vm0 = vcmp.lt.s32.totalorder %v1997_v4, 1  ;;  %1415 = vmatprep.subr.bf16.mxu1 %v1574_v13  ;;  %v354_v16 = vadd.s32 8, %v1997_v4  ;;  %v1580_v26 = vld [vmem:[#allocation2 + $0x20] sm:$0xff]   ;;  %v1571_v27 = vld [vmem:[#allocation2 + $0x78] sm:$0xff]  }
  0x8b   : > { %s1995_s28 = scalar_lea.vmem %s2139_s0, %s1300_s11  ;;  %v1582_v29 = vld [vmem:[#allocation2 + $0x28] sm:$0xff]   ;;  %v1573_v34 = vld [vmem:[#allocation2 + $0x80] sm:$0xff]   ;;  %vm672_vm6 = vcmp.lt.s32.totalorder %v1997_v4, 7  ;;  %v1584_v35 = vld [vmem:[#allocation2 + $0x30] sm:$0xff]   ;;  %v355_v36 = vadd.s32 16, %v1997_v4  ;;  %v356_v53 = vadd.s32 24, %v1997_v4 }
  0x8c   : > { %1436 = vmatpush3.bf16.msra.mxu0 %v1565_v1  ;;  %v2000_v7 = vld [vmem:[%s1995_s28] sm:$0xff]  ;;  %v2003_v8 = vld [vmem:[%s1995_s28 + $0x8] sm:$0xff]  ;;  %v2012_v15 = vld [vmem:[%s1995_s28 + $0x18] sm:$0xff]  ;;  %vm1373_vm1 = vcmp.ne.s32.totalorder %v361_v12, 0  ;;  %v368_v25 = vand.u32 15, %v354_v16  ;;  %s1372_s22 = sshll.u32 %s2163_s29, 4 }
  0x8d   : > { %1437 = vmatprep.subr.bf16.mxu0 %v1566_v3  ;;  %v417_v9 = vpack.c.bf16 %v2003_v8, %v2000_v7  ;;  %v435_v10 = vrot.slane %v2000_v7, 7  ;;  %v436_v11 = vrot.slane %v2003_v8, 7  ;;  %v438_v18 = vrot.slane %v2012_v15, 7  ;;  %1416 = vmatpush3.bf16.msra.mxu1 %v1574_v13  ;;  %vm1313_vm3 = vmpackc.low %vm1783_vm2, %vm1373_vm1  ;;  %v415_v31 = vld [vmem:[%s1995_s28 + $0x10] sm:$0xff]  ;;  %v1575_v39 = vld [vmem:[#allocation2 + $0x88] sm:$0xff]   ;;  %s349_s13 = scalar_lea.vmem %s2146_s7, %s1372_s22 }
  0x8e   : > { %1417 = vmatprep.subr.bf16.mxu1 %v1576_v17  ;;  %vm2023_vm4 = vcmp.eq.s32.totalorder %v368_v25, 15  ;;  %v668_v30 = vrot.slane %v2000_v7, 1  ;;  %v669_v32 = vrot.slane %v2003_v8, 1  ;;  %v670_v33 = vrot.slane %v415_v31, 1  ;;  %v1586_v40 = vld [vmem:[#allocation2 + $0x38] sm:$0xff]   ;;  %v1577_v48 = vld [vmem:[#allocation2 + $0x90] sm:$0xff]  }
  0x8f   : > { %1449 = vmatprep.mubr.bf16.mxu0 %v417_v9  ;;  %v442_v19 = vsel %vm439_vm0, %v435_v10, %v436_v11  ;;  %v443_v22 = vsel %vm439_vm0, %v438_v18, %v435_v10  ;;  %vm1336_vm5 = vmneg %vm2023_vm4  ;;  %v418_v38 = vpack.c.bf16 %v2012_v15, %v415_v31  ;;  %v437_v43 = vrot.slane %v415_v31, 7  ;;  %v1579_v50 = vld [vmem:[#allocation2 + $0x98] sm:$0xff]   ;;  %v1581_v51 = vld [vmem:[#allocation2 + $0xa0] sm:$0xff]  }
  0x90   : > { %1438 = vmatpush3.bf16.msra.mxu0 %v1566_v3  ;;  %v1314_v23 = vpack.c.bf16 %v442_v19, %v443_v22  ;;  %vm2035_vm7 = vmpackc.low %vm1336_vm5, %vm1783_vm2  ;;  %v674_v41 = vsel %vm672_vm6, %v669_v32, %v670_v33  ;;  %v675_v42 = vsel %vm672_vm6, %v668_v30, %v669_v32  ;;  %v375_v44 = vand.u32 15, %v355_v36  ;;  %v1583_v52 = vld [vmem:[#allocation2 + $0xa8] sm:$0xff]   ;;  %v1585_v54 = vld [vmem:[#allocation2 + $0xb0] sm:$0xff]  }
  0x91   : > { %1439 = vmatprep.subr.bf16.mxu0 %v1567_v5  ;;  %1418 = vmatpush3.bf16.msra.mxu1 %v1576_v17  ;;  %v1338_v45 = vpack.c.bf16 %v674_v41, %v675_v42  ;;  %v440_v46 = vsel %vm439_vm0, %v437_v43, %v438_v18  ;;  %v441_v47 = vsel %vm439_vm0, %v436_v11, %v437_v43  ;;  %v382_v55 = vand.u32 15, %v356_v53  ;;  %v1587_v57 = vld [vmem:[#allocation2 + $0xb8] sm:$0xff]   ;;  %v1588_v62 = vld [vmem:[#allocation6] sm:$0xff]   ;;  %v1590_v0 = vld [vmem:[#allocation6 + $0x8] sm:$0xff]  }
  0x92   : > { %1419 = vmatprep.subr.bf16.mxu1 %v1578_v21  ;;  %1429 = vmatprep.mubr.msk.bf16.mxu1 %vm1313_vm3, %v1314_v23  ;;  %vm1374_vm8 = vcmp.ne.s32.totalorder %v375_v44, 0  ;;  %v1318_v49 = vpack.c.bf16 %v440_v46, %v441_v47  ;;  %v671_v56 = vrot.slane %v2012_v15, 1  ;;  %v1589_v63 = vld [vmem:[#allocation6 + $0x10] sm:$0xff]   ;;  %v1591_v1 = vld [vmem:[#allocation6 + $0x18] sm:$0xff]   ;;  %v1594_v2 = vld [vmem:[%s2144_s5 + $0x4] ss:$8 sps:$4 sm:$0xff]  }
  0x93   : > { %vm1317_vm9 = vmpackc.low %vm1783_vm2, %vm1374_vm8  ;;  %vm2055_vm10 = vcmp.eq.s32.totalorder %v382_v55, 15  ;;  %v1344_v9 = vld [vmem:[#allocation4] ss:$0 sm:$0xff]  ;;  %v1595_v42 = vld [vmem:[%s2144_s5 + $0x10] ss:$8 sps:$4 sm:$0xff]  }
  0x94   : > { %1440 = vmatpush3.bf16.msra.mxu0 %v1567_v5  ;;  %v673_v59 = vsel %vm672_vm6, %v670_v33, %v671_v56  ;;  %v676_v60 = vsel %vm672_vm6, %v671_v56, %v668_v30  ;;  %vm1340_vm11 = vmneg %vm2055_vm10  ;;  %v1592_v32 = vld [vmem:[%s2144_s5] ss:$8 sps:$4 sm:$0xff]   ;;  %v1600_v43 = vld [vmem:[%s2144_s5 + $0x24] ss:$8 sps:$4 sm:$0xff]  }
  0x95   : > { %1441 = vmatprep.subr.bf16.mxu0 %v1568_v14  ;;  %1420 = vmatpush3.bf16.msra.mxu1 %v1578_v21  ;;  %v1342_v61 = vpack.c.bf16 %v676_v60, %v673_v59  ;;  %vm1341_vm12 = vmpackc.low %vm1340_vm11, %vm1783_vm2  ;;  %v1598_v28 = vld [vmem:[%s2144_s5 + $0x20] ss:$8 sps:$4 sm:$0xff]   ;;  %v1603_v44 = vld [vmem:[%s2144_s5 + $0x34] ss:$8 sps:$4 sm:$0xff]  }
  0x96   : > { %1421 = vmatprep.subr.bf16.mxu1 %v1580_v26  ;;  %v1606_v46 = vld [vmem:[%s2144_s5 + $0x44] ss:$8 sps:$4 sm:$0xff]   ;;  %v1604_v47 = vld [vmem:[%s2144_s5 + $0x40] ss:$8 sps:$4 sm:$0xff]   ;;  %v1613_v53 = vld [vmem:[%s2144_s5 + $0x70] ss:$8 sps:$4 sm:$0xff]  }
  0x97   : > { %v1353_v60 = vld [vmem:[#allocation7] ss:$0 sm:$0xff] }
  0x98   : > { %1442 = vmatpush3.bf16.msra.mxu0 %v1568_v14 }
  0x99   : > { %1443 = vmatprep.subr.bf16.mxu0 %v1569_v20  ;;  %1422 = vmatpush3.bf16.msra.mxu1 %v1580_v26 }
  0x9a   : > { %1423 = vmatprep.subr.bf16.mxu1 %v1582_v29 }
  0x9c   : > { %1444 = vmatpush3.bf16.msra.mxu0 %v1569_v20 }
  0x9d   : > { %1445 = vmatprep.subr.bf16.mxu0 %v1570_v24  ;;  %1424 = vmatpush3.bf16.msra.mxu1 %v1582_v29 }
  0x9e   : > { %1425 = vmatprep.subr.bf16.mxu1 %v1584_v35 }
  0xa0   : > { %1446 = vmatpush3.bf16.msra.mxu0 %v1570_v24 }
  0xa1   : > { %1447 = vmatprep.subr.bf16.mxu0 %v1571_v27  ;;  %1426 = vmatpush3.bf16.msra.mxu1 %v1584_v35  ;;  %v1597_v35 = vld [vmem:[%s2144_s5 + $0x14] ss:$8 sps:$4 sm:$0xff]  }
  0xa2   : > { %1427 = vmatprep.subr.bf16.mxu1 %v1586_v40 }
  0xa4   : > { %1448 = vmatpush3.bf16.msra.mxu0 %v1571_v27 }
  0xa5   : > { %1453 = vmatprep.subr.bf16.mxu0 %v1573_v34  ;;  %1428 = vmatpush3.bf16.msra.mxu1 %v1586_v40 }
  0xa6   : > { %1481 = vmatprep.subr.bf16.mxu1 %v1588_v62 }
  0xa7   : > { %1450 = vmatmul.mubr.bf16.vlgmr.msra.gmra.mrb[0].mxu0 %v418_v38 }
  0xa8   : > { %1454 = vmatpush3.bf16.msra.mxu0 %v1573_v34  ;;  %1469 = vmatprep.mubr.msk.bf16.mxu0 %vm2035_vm7, %v1338_v45  ;;  %v1601_v45 = vld [vmem:[%s2144_s5 + $0x30] ss:$8 sps:$4 sm:$0xff]  }
  0xa9   : > { %1455 = vmatprep.subr.bf16.mxu0 %v1575_v39  ;;  %1430 = vmatmul.mubr.msk.bf16.vlgmr.msra.gmra.mrb[0].mxu1 %vm1317_vm9, %v1318_v49  ;;  %v1607_v49 = vld [vmem:[%s2144_s5 + $0x50] ss:$8 sps:$4 sm:$0xff]  }
  0xaa   : > { %1482 = vmatpush3.bf16.msra.mxu1 %v1588_v62 }
  0xab   : > { %1483 = vmatprep.subr.bf16.mxu1 %v1590_v0 }
  0xac   : > { %1456 = vmatpush3.bf16.msra.mxu0 %v1575_v39 }
  0xad   : > { %1457 = vmatprep.subr.bf16.mxu0 %v1577_v48 }
  0xae   : > { %1484 = vmatpush3.bf16.msra.mxu1 %v1590_v0 }
  0xaf   : > { %1107 = vmatprep.subr.bf16.mxu1 %v1594_v2 }
  0xb0   : > { %1458 = vmatpush3.bf16.msra.mxu0 %v1577_v48  ;;  %v1609_v48 = vld [vmem:[%s2144_s5 + $0x54] ss:$8 sps:$4 sm:$0xff]  }
  0xb1   : > { %1459 = vmatprep.subr.bf16.mxu0 %v1579_v50 }
  0xb4   : > { %1460 = vmatpush3.bf16.msra.mxu0 %v1579_v50  ;;  %v1612_v50 = vld [vmem:[%s2144_s5 + $0x64] ss:$8 sps:$4 sm:$0xff]  }
  0xb5   : > { %1461 = vmatprep.subr.bf16.mxu0 %v1581_v51 }
  0xb8   : > { %1462 = vmatpush3.bf16.msra.mxu0 %v1581_v51  ;;  %v1610_v51 = vld [vmem:[%s2144_s5 + $0x60] ss:$8 sps:$4 sm:$0xff]  }
  0xb9   : > { %1463 = vmatprep.subr.bf16.mxu0 %v1583_v52 }
  0xbc   : > { %1464 = vmatpush3.bf16.msra.mxu0 %v1583_v52  ;;  %v1615_v52 = vld [vmem:[%s2144_s5 + $0x74] ss:$8 sps:$4 sm:$0xff]  }
  0xbd   : > { %1465 = vmatprep.subr.bf16.mxu0 %v1585_v54 }
  0xc0   : > { %1466 = vmatpush3.bf16.msra.mxu0 %v1585_v54  ;;  %v1784_v54 = vmov 0  }
  0xc1   : > { %1467 = vmatprep.subr.bf16.mxu0 %v1587_v57 }
  0xc4   : > { %1468 = vmatpush3.bf16.msra.mxu0 %v1587_v57 }
  0xc5   : > { %1473 = vmatprep.subr.bf16.mxu0 %v1589_v63 }
  0xc7   : > { %1470 = vmatmul.mubr.msk.bf16.vlgmr.msra.gmra.mrb[0].mxu0 %vm1341_vm12, %v1342_v61 }
  0xc8   : > { %1474 = vmatpush3.bf16.msra.mxu0 %v1589_v63 }
  0xc9   : > { %1475 = vmatprep.subr.bf16.mxu0 %v1591_v1 }
  0xcc   : > { %1476 = vmatpush3.bf16.msra.mxu0 %v1591_v1 }
 0x17c   : > { %v1431_v3 = vpop.f32.mrb[0].mxu1 }
 0x17d   : > { %v556_v5 = vpop.f32.mrb[1].mxu1 }
 0x17e   : > { %v1432_v6 = vpop.f32.mrb[2].mxu1 }
 0x17f   : > { %v559_v7 = vpop.f32.mrb[3].mxu1 }
 0x19a   : > { %v1471_v8 = vpop.f32.mrb[0].mxu0 }
 0x19b   : > { %v1489_v10 = vadd.f32 %v1471_v8, %v1431_v3  ;;  %v789_v11 = vpop.f32.mrb[1].mxu0 }
 0x19c   : > { %v1490_v12 = vadd.f32 %v789_v11, %v556_v5  ;;  %v1472_v13 = vpop.f32.mrb[2].mxu0 }
 0x19d   : > { %v817_v14 = vadd.f32 %v1489_v10, %v1344_v9  ;;  %v1491_v15 = vadd.f32 %v1472_v13, %v1432_v6  ;;  %v792_v16 = vpop.f32.mrb[3].mxu0 }
 0x19e   : > { %v815_v17 = vadd.f32 %v1490_v12, %v1344_v9  ;;  %v1492_v18 = vadd.f32 %v792_v16, %v559_v7  ;;  %v1015_v16 = vld [vmem:[#allocation9] sm:$0x3] }
 0x19f   : > { %v821_v19 = vmax.f32 %v817_v14, 0.0  ;;  %v818_v20 = vadd.f32 %v1491_v15, %v1344_v9  ;;  %v1019_v15 = vsub.s32 0, %v1997_v4 }
 0x1a0   : > { %v819_v21 = vmax.f32 %v815_v17, 0.0  ;;  %v816_v22 = vadd.f32 %v1492_v18, %v1344_v9  ;;  %v1023_v17 = vsub.s32 1, %v1997_v4 }
 0x1a1   : > { %v822_v23 = vmax.f32 %v818_v20, 0.0  ;;  %v831_v26 = vrot.slane %v821_v19, 1  ;;  %v1020_v18 = vrot.slane %v1015_v16, %v1019_v15 }
 0x1a2   : > { %v829_v24 = vrot.slane %v819_v21, 1  ;;  %v820_v25 = vmax.f32 %v816_v22, 0.0 }
 0x1a3   : > { %v824_v27 = vpack.c.bf16 %v822_v23, %v821_v19  ;;  %v832_v29 = vrot.slane %v822_v23, 1  ;;  %v1024_v19 = vrot.slane %v1015_v16, %v1023_v17 }
 0x1a4   : > { %v823_v30 = vpack.c.bf16 %v820_v25, %v819_v21  ;;  %v830_v31 = vrot.slane %v820_v25, 1 }
 0x1a5   : > { %v833_v33 = vsel %vm672_vm6, %v831_v26, %v832_v29  ;;  %v836_v34 = vsel %vm672_vm6, %v832_v29, %v829_v24 }
 0x1a6   : > { %v840_v36 = vsel %vm2055_vm10, 0.0, %v836_v34  ;;  %1485 = vmatprep.mubr.msk.bf16.mxu1 %vm859_vm13, %v823_v30  ;;  %v834_v37 = vsel %vm672_vm6, %v830_v31, %v831_v26  ;;  %v835_v38 = vsel %vm672_vm6, %v829_v24, %v830_v31 }
 0x1a7   : > { %v842_v39 = vpack.c.bf16 %v840_v36, %v833_v33  ;;  %1486 = vmatmul.mubr.msk.bf16.vlgmr.msra.gmra.mrb[4].mxu1 %vm859_vm13, %v824_v27  ;;  %v838_v40 = vsel %vm2023_vm4, 0.0, %v834_v37 }
 0x1a8   : > { %v841_v41 = vpack.c.bf16 %v838_v40, %v835_v38  ;;  %1108 = vmatpush1.bf16.msra.mxu1 %v1592_v32  ;;  %1139 = vmatprep.mubr.bf16.mxu1 %v1784_v54 }
 0x1a9   : > { %1109 = vmatprep.subr.bf16.mxu1 %v1597_v35 }
 0x1aa   : > { %1477 = vmatprep.mubr.msk.bf16.mxu0 %vm859_vm13, %v841_v41 }
 0x1ab   : > { %1478 = vmatmul.mubr.msk.bf16.vlgmr.msra.gmra.mrb[4].mxu0 %vm859_vm13, %v842_v39 }
 0x1ac   : > { %1110 = vmatpush1.bf16.msra.mxu1 %v1595_v42 }
 0x1ad   : > { %1111 = vmatprep.subr.bf16.mxu1 %v1600_v43 }
 0x1b0   : > { %1112 = vmatpush1.bf16.msra.mxu1 %v1598_v28 }
 0x1b1   : > { %1113 = vmatprep.subr.bf16.mxu1 %v1603_v44 }
 0x1b4   : > { %1114 = vmatpush1.bf16.msra.mxu1 %v1601_v45 }
 0x1b5   : > { %1115 = vmatprep.subr.bf16.mxu1 %v1606_v46 }
 0x1b8   : > { %1116 = vmatpush1.bf16.msra.mxu1 %v1604_v47 }
 0x1b9   : > { %1117 = vmatprep.subr.bf16.mxu1 %v1609_v48 }
 0x1bc   : > { %1118 = vmatpush1.bf16.msra.mxu1 %v1607_v49 }
 0x1bd   : > { %1119 = vmatprep.subr.bf16.mxu1 %v1612_v50 }
 0x1c0   : > { %1120 = vmatpush1.bf16.msra.mxu1 %v1610_v51 }
 0x1c1   : > { %1121 = vmatprep.subr.bf16.mxu1 %v1615_v52 }
 0x1c4   : > { %1122 = vmatpush1.bf16.msra.mxu1 %v1613_v53 }
 0x27a   : > { %v1487_v55 = vpop.f32.mrb[4].mxu1 }
 0x27b   : > { %v967_v56 = vpop.f32.mrb[5].mxu1 }
 0x27c   : > { %v1488_v57 = vpop.f32.mrb[6].mxu1 }
 0x27d   : > { %v970_v58 = vpop.f32.mrb[7].mxu1 }
 0x27e   : > { %v1479_v59 = vpop.f32.mrb[4].mxu0 }
 0x27f   : > { %v976_v61 = vadd.f32 %v1487_v55, %v1479_v59  ;;  %v900_v62 = vpop.f32.mrb[5].mxu0 }
 0x280   : > { %v968_v63 = vadd.f32 %v967_v56, %v900_v62  ;;  %v1480_v0 = vpop.f32.mrb[6].mxu0 }
 0x281   : > { %v991_v1 = vadd.f32 %v1353_v60, %v976_v61  ;;  %v979_v2 = vadd.f32 %v1488_v57, %v1480_v0  ;;  %v903_v3 = vpop.f32.mrb[7].mxu0 }
 0x282   : > { %v989_v5 = vadd.f32 %v1353_v60, %v968_v63  ;;  %v971_v6 = vadd.f32 %v970_v58, %v903_v3 }
 0x283   : > { %v992_v7 = vadd.f32 %v1353_v60, %v979_v2  ;;  %v995_v9 = vmax.f32 %v991_v1, 0.0 }
 0x284   : > { %v990_v8 = vadd.f32 %v1353_v60, %v971_v6  ;;  %v993_v11 = vmax.f32 %v989_v5, 0.0 }
 0x285   : > { %v996_v10 = vmax.f32 %v992_v7, 0.0 }
 0x286   : > { %v994_v12 = vmax.f32 %v990_v8, 0.0 }
 0x287   : > { %v998_v13 = vpack.c.bf16 %v996_v10, %v995_v9 }
 0x288   : > { %v997_v14 = vpack.c.bf16 %v994_v12, %v993_v11 }
 0x28a   : > { %1140 = vmatmul.mubr.bf16.vlgmr.msra.gmra.mrb[8].mxu1 %v997_v14 }
 0x28b   : > { %1149 = vmatprep.mubr.bf16.mxu1 %v1784_v54 }
 0x292   : > { %1150 = vmatmul.mubr.bf16.gmra.mrb[12].mxu1 %v998_v13 }
 0x35d   : > { %v1141_v20 = vpop.f32.mrb[8].mxu1 }
 0x35e   : > { %v1142_v21 = vadd.f32 %v1141_v20, %v1020_v18  ;;  %v1143_v22 = vpop.f32.mrb[9].mxu1 }
 0x35f   : > { %v1144_v23 = vadd.f32 %v1143_v22, %v1024_v19  ;;  %v1145_v24 = vpop.f32.mrb[10].mxu1 }
 0x360   : > { %v1160_v25 = vmax.f32 %v1142_v21, 0.0  ;;  %v1146_v26 = vadd.f32 %v1145_v24, %v1020_v18  ;;  %v1147_v27 = vpop.f32.mrb[11].mxu1 }
 0x361   : > { %v1161_v29 = vmax.f32 %v1144_v23, 0.0  ;;  %v1148_v30 = vadd.f32 %v1147_v27, %v1024_v19 }
 0x362   : > { %1168 = vst [vmem:[%s349_s13] sm:$0xff] %v1160_v25  ;;  %v1162_v31 = vmax.f32 %v1146_v26, 0.0 }
 0x363   : > { %1169 = vst [vmem:[%s349_s13 + $0x8] sm:$0xff] %v1161_v29  ;;  %v1163_v4 = vmax.f32 %v1148_v30, 0.0 }
 0x364   : > { %1170 = vst [vmem:[%s349_s13 + $0x10] sm:$0xff] %v1162_v31 }
 0x365   : > { %1171 = vst [vmem:[%s349_s13 + $0x18] sm:$0xff] %v1163_v4  ;;  %v1151_v32 = vpop.f32.mrb[12].mxu1 }
 0x366   : > { %v1152_v33 = vadd.f32 %v1151_v32, %v1020_v18  ;;  %v1153_v34 = vpop.f32.mrb[13].mxu1 }
 0x367   : > { %v1154_v35 = vadd.f32 %v1153_v34, %v1024_v19  ;;  %v1155_v36 = vpop.f32.mrb[14].mxu1 }
 0x368   : > { %v1164_v37 = vmax.f32 %v1152_v33, 0.0  ;;  %v1156_v38 = vadd.f32 %v1155_v36, %v1020_v18  ;;  %v1157_v39 = vpop.f32.mrb[15].mxu1 }
 0x369   : > { %v1165_v40 = vmax.f32 %v1154_v35, 0.0  ;;  %v1158_v41 = vadd.f32 %v1157_v39, %v1024_v19 }
 0x36a   : > { %1172 = vst [vmem:[%s349_s13 + $0x20] sm:$0xff] %v1164_v37  ;;  %v1166_v42 = vmax.f32 %v1156_v38, 0.0 }
 0x36b   : > { %1173 = vst [vmem:[%s349_s13 + $0x28] sm:$0xff] %v1165_v40  ;;  %v1167_v43 = vmax.f32 %v1158_v41, 0.0 }
 0x36c   : > { %1174 = vst [vmem:[%s349_s13 + $0x30] sm:$0xff] %v1166_v42 }
 0x36d   : > { %1175 = vst [vmem:[%s349_s13 + $0x38] sm:$0xff] %v1167_v43 }
 0x36e PF: > { %s20_s24 = sadd.s32 1, %s1774_s24  }
 0x36f   : > { %p17_p7 = scmp.ge.s32.totalorder %s20_s24, 4  }
 0x371   :  { %19 = sbr.rel (!%p17_p7) target bundleno = 3 (0x3), region = 99 }
 0x378   :  { %1200 = vsyncpa [#allocation3], 1 }
 0x379   :  { %1202 = vsyncpa [#allocation3 + $0x1], 1 }
 0x37a   :  { %1203 = vsyncpa [#allocation5], 1 }
 0x37b   :  { %1204 = vsyncpa [#allocation8], 1 }

</bundles_post_ra>
